<compile_context>
chip_gen: v7x
topology: tpu7x:2x2x1
jax: 0.10.0
libtpu: 0.0.40
codegen_flags: <defaults>
</compile_context>

<pallas_src>
import jax
import jax.numpy as jnp
import numpy as np
from jax.experimental import pallas as pl
from jax.experimental.pallas import tpu as pltpu


def _lrelu(v):
    # LeakyReLU(0.1): x if x >= 0 else 0.1 * x   (module uses slope 0.1)
    return jnp.maximum(v, 0.1 * v)


def _round_up(n, m):
    return ((n + m - 1) // m) * m


def _cdiv(a, b):
    return -(-a // b)


def ranker_kernel(x_ref,
                  w1_ref, b1_ref,
                  w2_ref, b2_ref,
                  w3_ref, b3_ref,
                  w4_ref, b4_ref,
                  o_ref):
    cdt = w1_ref.dtype  # compute/streaming dtype for the big matmuls (f32 or bf16)

    # First LeakyReLU in the streaming dtype, single cast to compute dtype.
    h = _lrelu(x_ref[...]).astype(cdt)                                        # (T, 256)
    h = jnp.dot(h, w1_ref[...],
                preferred_element_type=jnp.float32) + b1_ref[...]             # (T, 128) f32
    h = _lrelu(h).astype(cdt)
    h = jnp.dot(h, w2_ref[...],
                preferred_element_type=jnp.float32) + b2_ref[...]             # (T, 64) f32
    h = _lrelu(h).astype(cdt)
    h = jnp.dot(h, w3_ref[...],
                preferred_element_type=jnp.float32) + b3_ref[...]             # (T, 32) f32
    h = _lrelu(h)                                                             # (T, 32) f32

    # Final Linear(32, 1) off the MXU: transpose (T,32)->(32,T) on the (idle)
    # XLU, multiply by the f32 weight column on the VPU, reduce over the 32
    # sublanes.  Result (1, T) is lane-dense -> unmasked vector stores.
    ht = h.T                                                                  # (32, T)
    y = jnp.sum(ht * w4_ref[...], axis=0, keepdims=True) + b4_ref[...]        # (1, T) f32
    o_ref[...] = y.reshape(o_ref.shape)                                       # (1, 1, T)


def ranker_forward(x, params, *, batch_tile=2048, compute_dtype=jnp.bfloat16):
    """x: (B, 256) float32 (or bf16). Returns (B,) float32 scores (= .squeeze(-1))."""
    B, D = x.shape
    assert D == 256, "Ranker expects 256 input features"
    (w1, b1), (w2, b2), (w3, b3), (w4, b4) = params

    # Tile: multiple of 128 (lane-dense output), capped by batch_tile, and no
    # larger than half the (rounded-up) batch so the grid keeps >= 2 steps when
    # possible (v7x has 2 TensorCores; "parallel" only helps with grid >= 2).
    bt = _round_up(max(int(batch_tile), 128), 128)
    half = _round_up(_cdiv(max(B, 1), 2), 128)
    tile = min(bt, half)
    grid = _cdiv(B, tile)  # ragged last block handled by Pallas; no padding pass

    cdt = jnp.dtype(compute_dtype)
    # Weights for the three big matmuls stream in the compute dtype (tiny, ~170 KB
    # total).  x is NOT cast here - it streams as-is and is cast in-kernel.
    w1c, w2c, w3c = (w.astype(cdt) for w in (w1, w2, w3))
    # Biases + final Linear(32,1) stay f32.

    full = lambda shape: pl.BlockSpec(shape, lambda i: (0, 0))

    out = pl.pallas_call(
        ranker_kernel,
        out_shape=jax.ShapeDtypeStruct((grid, 1, tile), jnp.float32),
        grid_spec=pltpu.PrefetchScalarGridSpec(
            num_scalar_prefetch=0,
            grid=(grid,),
            in_specs=[
                pl.BlockSpec((tile, 256), lambda i: (i, 0)),   # x tile (streamed)
                full((256, 128)), full((1, 128)),              # Linear(256,128)
                full((128, 64)),  full((1, 64)),               # Linear(128,64)
                full((64, 32)),   full((1, 32)),               # Linear(64,32)
                full((32, 1)),    full((1, 1)),                # Linear(32,1)
            ],
            out_specs=pl.BlockSpec((1, 1, tile), lambda i: (i, 0, 0)),
        ),
        compiler_params=pltpu.CompilerParams(
            dimension_semantics=("parallel",)),
    )(x, w1c, b1, w2c, b2, w3c, b3, w4, b4)

    # (grid, 1, tile) -> (grid*tile,), drop the ragged tail rows.  This is the
    # module's .squeeze(-1).
    return out.reshape(grid * tile)[:B]


def init_ranker_params(key):
    """Matches PyTorch nn.Linear default init (uniform +-1/sqrt(fan_in)).
    Weights stored transposed: (in_features, out_features); biases (1, out)."""
    dims = [(256, 128), (128, 64), (64, 32), (32, 1)]
    params = []
    for (fan_in, fan_out) in dims:
        key, kw, kb = jax.random.split(key, 3)
        bound = 1.0 / np.sqrt(fan_in)
        w = jax.random.uniform(kw, (fan_in, fan_out), jnp.float32, -bound, bound)
        b = jax.random.uniform(kb, (1, fan_out), jnp.float32, -bound, bound)
        params.append((w, b))
    return params


def ranker_reference(x, params):
    """Pure-JAX reference for correctness checking."""
    h = jnp.where(x >= 0, x, 0.1 * x)
    for i, (w, b) in enumerate(params):
        h = h @ w + b
        if i < len(params) - 1:
            h = jnp.where(h >= 0, h, 0.1 * h)
    return h[:, 0]


if __name__ == "__main__":
    key = jax.random.PRNGKey(0)
    kx, kx2, kp = jax.random.split(key, 3)
    params = init_ranker_params(kp)

    # --- small batch, exact f32 path (single ragged tile of 128 rows) ---
    B = 8
    x = jax.random.normal(kx, (B, 256), dtype=jnp.float32)
    score = jax.block_until_ready(
        ranker_forward(x, params, compute_dtype=jnp.float32))
    ref = ranker_reference(x, params)
    np.testing.assert_allclose(np.asarray(score), np.asarray(ref),
                               rtol=1e-5, atol=1e-5)
    assert score.shape == (B,)

    # --- ragged multi-tile grid, default bf16-MXU / f32-accumulate path ---
    B2 = 300
    x2 = jax.random.normal(kx2, (B2, 256), dtype=jnp.float32)
    score2 = jax.block_until_ready(
        ranker_forward(x2, params, batch_tile=128))   # grid=3, last block ragged
    ref2 = ranker_reference(x2, params)
    np.testing.assert_allclose(np.asarray(score2), np.asarray(ref2),
                               rtol=5e-2, atol=5e-2)
    assert score2.shape == (B2,)

    # --- default tile selection (>=2 grid steps, bf16 default) ---
    score3 = jax.block_until_ready(ranker_forward(x2, params))
    np.testing.assert_allclose(np.asarray(score3), np.asarray(ref2),
                               rtol=5e-2, atol=5e-2)

    print("KERNEL_OK")
</pallas_src>

<mosaic_0001>
module attributes {stable_mosaic.version = 11 : i64} {
  func.func @ranker_kernel(%arg0: i32, %arg1: memref<128x256xf32, #tpu.memory_space<vmem>>, %arg2: memref<256x128xf32, #tpu.memory_space<vmem>>, %arg3: memref<1x128xf32, #tpu.memory_space<vmem>>, %arg4: memref<128x64xf32, #tpu.memory_space<vmem>>, %arg5: memref<1x64xf32, #tpu.memory_space<vmem>>, %arg6: memref<64x32xf32, #tpu.memory_space<vmem>>, %arg7: memref<1x32xf32, #tpu.memory_space<vmem>>, %arg8: memref<32x1xf32, #tpu.memory_space<vmem>>, %arg9: memref<1x1xf32, #tpu.memory_space<vmem>>, %arg10: memref<1x1x128xf32, #tpu.memory_space<vmem>>) attributes {dimension_semantics = [#tpu.dimension_semantics<parallel>], iteration_bounds = array<i64: 1>, scalar_prefetch = 0 : i64, scratch_operands = 0 : i64, tpu.core_type = #tpu.core_type<tc>, window_params = [{transform_indices = @transform_0, window_bounds = array<i64: 128, 256>}, {pipeline_mode = #tpu.pipeline_mode<synchronous>, transform_indices = @transform_1, window_bounds = array<i64: 256, 128>}, {pipeline_mode = #tpu.pipeline_mode<synchronous>, transform_indices = @transform_2, window_bounds = array<i64: 1, 128>}, {pipeline_mode = #tpu.pipeline_mode<synchronous>, transform_indices = @transform_3, window_bounds = array<i64: 128, 64>}, {pipeline_mode = #tpu.pipeline_mode<synchronous>, transform_indices = @transform_4, window_bounds = array<i64: 1, 64>}, {pipeline_mode = #tpu.pipeline_mode<synchronous>, transform_indices = @transform_5, window_bounds = array<i64: 64, 32>}, {pipeline_mode = #tpu.pipeline_mode<synchronous>, transform_indices = @transform_6, window_bounds = array<i64: 1, 32>}, {pipeline_mode = #tpu.pipeline_mode<synchronous>, transform_indices = @transform_7, window_bounds = array<i64: 32, 1>}, {pipeline_mode = #tpu.pipeline_mode<synchronous>, transform_indices = @transform_8, window_bounds = array<i64: 1, 1>}, {transform_indices = @transform_9, window_bounds = array<i64: 1, 1, 128>}]} {
    %c0 = arith.constant 0 : index
    %c0_0 = arith.constant 0 : index
    %0 = vector.load %arg1[%c0, %c0_0] : memref<128x256xf32, #tpu.memory_space<vmem>>, vector<128x256xf32>
    %cst = arith.constant 1.000000e-01 : f32
    %1 = vector.broadcast %cst : f32 to vector<128x256xf32>
    %2 = arith.mulf %1, %0 : vector<128x256xf32>
    %3 = arith.maximumf %0, %2 : vector<128x256xf32>
    %c0_1 = arith.constant 0 : index
    %c0_2 = arith.constant 0 : index
    %4 = vector.load %arg2[%c0_1, %c0_2] : memref<256x128xf32, #tpu.memory_space<vmem>>, vector<256x128xf32>
    %cst_3 = arith.constant dense<0.000000e+00> : vector<128x128xf32>
    %5 = tpu.matmul %3, %4, %cst_3 {dimension_numbers = #tpu.dot_dimension_numbers<[1], [0], [0], [1], [0, 0, 1, 1], [], []>} : vector<128x256xf32>, vector<256x128xf32>, vector<128x128xf32> -> vector<128x128xf32>
    %c0_4 = arith.constant 0 : index
    %c0_5 = arith.constant 0 : index
    %6 = vector.load %arg3[%c0_4, %c0_5] : memref<1x128xf32, #tpu.memory_space<vmem>>, vector<1x128xf32>
    %7 = vector.broadcast %6 : vector<1x128xf32> to vector<128x128xf32>
    %8 = arith.addf %5, %7 : vector<128x128xf32>
    %cst_6 = arith.constant 1.000000e-01 : f32
    %9 = vector.broadcast %cst_6 : f32 to vector<128x128xf32>
    %10 = arith.mulf %9, %8 : vector<128x128xf32>
    %11 = arith.maximumf %8, %10 : vector<128x128xf32>
    %c0_7 = arith.constant 0 : index
    %c0_8 = arith.constant 0 : index
    %12 = vector.load %arg4[%c0_7, %c0_8] : memref<128x64xf32, #tpu.memory_space<vmem>>, vector<128x64xf32>
    %cst_9 = arith.constant dense<0.000000e+00> : vector<128x64xf32>
    %13 = tpu.matmul %11, %12, %cst_9 {dimension_numbers = #tpu.dot_dimension_numbers<[1], [0], [0], [1], [0, 0, 1, 1], [], []>} : vector<128x128xf32>, vector<128x64xf32>, vector<128x64xf32> -> vector<128x64xf32>
    %c0_10 = arith.constant 0 : index
    %c0_11 = arith.constant 0 : index
    %14 = vector.load %arg5[%c0_10, %c0_11] : memref<1x64xf32, #tpu.memory_space<vmem>>, vector<1x64xf32>
    %15 = vector.broadcast %14 : vector<1x64xf32> to vector<128x64xf32>
    %16 = arith.addf %13, %15 : vector<128x64xf32>
    %cst_12 = arith.constant 1.000000e-01 : f32
    %17 = vector.broadcast %cst_12 : f32 to vector<128x64xf32>
    %18 = arith.mulf %17, %16 : vector<128x64xf32>
    %19 = arith.maximumf %16, %18 : vector<128x64xf32>
    %c0_13 = arith.constant 0 : index
    %c0_14 = arith.constant 0 : index
    %20 = vector.load %arg6[%c0_13, %c0_14] : memref<64x32xf32, #tpu.memory_space<vmem>>, vector<64x32xf32>
    %cst_15 = arith.constant dense<0.000000e+00> : vector<128x32xf32>
    %21 = tpu.matmul %19, %20, %cst_15 {dimension_numbers = #tpu.dot_dimension_numbers<[1], [0], [0], [1], [0, 0, 1, 1], [], []>} : vector<128x64xf32>, vector<64x32xf32>, vector<128x32xf32> -> vector<128x32xf32>
    %c0_16 = arith.constant 0 : index
    %c0_17 = arith.constant 0 : index
    %22 = vector.load %arg7[%c0_16, %c0_17] : memref<1x32xf32, #tpu.memory_space<vmem>>, vector<1x32xf32>
    %23 = vector.broadcast %22 : vector<1x32xf32> to vector<128x32xf32>
    %24 = arith.addf %21, %23 : vector<128x32xf32>
    %cst_18 = arith.constant 1.000000e-01 : f32
    %25 = vector.broadcast %cst_18 : f32 to vector<128x32xf32>
    %26 = arith.mulf %25, %24 : vector<128x32xf32>
    %27 = arith.maximumf %24, %26 : vector<128x32xf32>
    %28 = tpu.transpose %27, [1, 0] : vector<128x32xf32> -> vector<32x128xf32>
    %c0_19 = arith.constant 0 : index
    %c0_20 = arith.constant 0 : index
    %29 = vector.load %arg8[%c0_19, %c0_20] : memref<32x1xf32, #tpu.memory_space<vmem>>, vector<32x1xf32>
    %30 = vector.broadcast %29 : vector<32x1xf32> to vector<32x128xf32>
    %31 = arith.mulf %28, %30 : vector<32x128xf32>
    %cst_21 = arith.constant dense<0.000000e+00> : vector<128xf32>
    %32 = vector.multi_reduction <add>, %31, %cst_21 [0] : vector<32x128xf32> to vector<128xf32>
    %33 = vector.shape_cast %32 : vector<128xf32> to vector<1x128xf32>
    %c0_22 = arith.constant 0 : index
    %c0_23 = arith.constant 0 : index
    %34 = vector.load %arg9[%c0_22, %c0_23] : memref<1x1xf32, #tpu.memory_space<vmem>>, vector<1x1xf32>
    %35 = vector.broadcast %34 : vector<1x1xf32> to vector<1x128xf32>
    %36 = arith.addf %33, %35 : vector<1x128xf32>
    %37 = vector.shape_cast %36 : vector<1x128xf32> to vector<1x1x128xf32>
    %c0_24 = arith.constant 0 : index
    %c0_25 = arith.constant 0 : index
    %c0_26 = arith.constant 0 : index
    %38 = vector.load %arg10[%c0_24, %c0_25, %c0_26] : memref<1x1x128xf32, #tpu.memory_space<vmem>>, vector<1x1x128xf32>
    tpu.vector_store %arg10[%c0_24, %c0_25, %c0_26], %37 {strides = array<i32>} : memref<1x1x128xf32, #tpu.memory_space<vmem>>, vector<1x1x128xf32>,
    return
  }
  func.func @transform_0(%arg0: i32) -> (i32, i32) {
    %c0_i32 = arith.constant 0 : i32
    %c0_i32_0 = arith.constant 0 : i32
    return %arg0, %c0_i32 : i32, i32
  }
  func.func @transform_1(%arg0: i32) -> (i32, i32) {
    %c0_i32 = arith.constant 0 : i32
    %c0_i32_0 = arith.constant 0 : i32
    %c0_i32_1 = arith.constant 0 : i32
    return %c0_i32, %c0_i32_0 : i32, i32
  }
  func.func @transform_2(%arg0: i32) -> (i32, i32) {
    %c0_i32 = arith.constant 0 : i32
    %c0_i32_0 = arith.constant 0 : i32
    %c0_i32_1 = arith.constant 0 : i32
    return %c0_i32, %c0_i32_0 : i32, i32
  }
  func.func @transform_3(%arg0: i32) -> (i32, i32) {
    %c0_i32 = arith.constant 0 : i32
    %c0_i32_0 = arith.constant 0 : i32
    %c0_i32_1 = arith.constant 0 : i32
    return %c0_i32, %c0_i32_0 : i32, i32
  }
  func.func @transform_4(%arg0: i32) -> (i32, i32) {
    %c0_i32 = arith.constant 0 : i32
    %c0_i32_0 = arith.constant 0 : i32
    %c0_i32_1 = arith.constant 0 : i32
    return %c0_i32, %c0_i32_0 : i32, i32
  }
  func.func @transform_5(%arg0: i32) -> (i32, i32) {
    %c0_i32 = arith.constant 0 : i32
    %c0_i32_0 = arith.constant 0 : i32
    %c0_i32_1 = arith.constant 0 : i32
    return %c0_i32, %c0_i32_0 : i32, i32
  }
  func.func @transform_6(%arg0: i32) -> (i32, i32) {
    %c0_i32 = arith.constant 0 : i32
    %c0_i32_0 = arith.constant 0 : i32
    %c0_i32_1 = arith.constant 0 : i32
    return %c0_i32, %c0_i32_0 : i32, i32
  }
  func.func @transform_7(%arg0: i32) -> (i32, i32) {
    %c0_i32 = arith.constant 0 : i32
    %c0_i32_0 = arith.constant 0 : i32
    %c0_i32_1 = arith.constant 0 : i32
    return %c0_i32, %c0_i32_0 : i32, i32
  }
  func.func @transform_8(%arg0: i32) -> (i32, i32) {
    %c0_i32 = arith.constant 0 : i32
    %c0_i32_0 = arith.constant 0 : i32
    %c0_i32_1 = arith.constant 0 : i32
    return %c0_i32, %c0_i32_0 : i32, i32
  }
  func.func @transform_9(%arg0: i32) -> (i32, i32, i32) {
    %c0_i32 = arith.constant 0 : i32
    %c0_i32_0 = arith.constant 0 : i32
    %c0_i32_1 = arith.constant 0 : i32
    return %arg0, %c0_i32, %c0_i32_0 : i32, i32, i32
  }
}

</mosaic_0001>

<bundles_post_ra>
// kernel: tpu_custom_call.1
= control target key start
LH: loop header
LB: loop body
LE: loop exit
PB: predicated region body
PF: predicated region fallthrough
CT: control target
= control target key end

     0   :  { %s1625_s0 = inlined_call_operand.hbm [shape: f32[8,256], index: 0, kind: input, shape index: {}]   ;;  %s1626_s1 = inlined_call_operand.vmem [shape: f32[256,128], index: 1, kind: input, shape index: {}]   ;;  %s1627_s2 = inlined_call_operand.vmem [shape: f32[1,128], index: 2, kind: input, shape index: {}]   ;;  %s1628_s3 = inlined_call_operand.vmem [shape: f32[128,64], index: 3, kind: input, shape index: {}]   ;;  %s1629_s4 = inlined_call_operand.vmem [shape: f32[1,64], index: 4, kind: input, shape index: {}]   ;;  %s1630_s5 = inlined_call_operand.vmem [shape: f32[64,32], index: 5, kind: input, shape index: {}]   ;;  %s1631_s6 = inlined_call_operand.vmem [shape: f32[1,32], index: 6, kind: input, shape index: {}]   ;;  %s1632_s7 = inlined_call_operand.vmem [shape: f32[32,1], index: 7, kind: input, shape index: {}]   ;;  %s1633_s8 = inlined_call_operand.<no memory space> [shape: f32[1,1], index: 8, kind: input, shape index: {}]   ;;  %s1634_s9 = inlined_call_operand.hbm [shape: f32[1,1,128], index: 9, kind: output, shape index: {}]  }
   0x1   :  { %v14_v0 = vstv %s1633_s8 }
   0x2   :  { %15 = vst [vmem:[#allocation2] sm:$0x1] %v14_v0 }
   0x3   :  { %16 = vsyncpa [#allocation4], 0 }
   0x4   :  { %17 = vsyncpa [#allocation5], 0 }
   0x5   :  { %22 = vsyncadd [#allocation4], 3840  ;;  %s1284_s11 = smov [#allocation3]   ;;  %s1236_s15 = scalar_lea.hbm %s1625_s0, 256 }
   0x6   :  { %s23_s12 = sshll.u32 %s1284_s11, 4  ;;  %p1237_p0 = scmp.ne.s32.totalorder %s1625_s0, %s1236_s15  ;;  %s24_s12 = int_to_ptr.vmem [resolvable:$true] %s23_s12 }
   0x7   :  { %p1240_p1 = scmp.lt.u32.totalorder %s1236_s15, %s1625_s0 }
   0x9   :  { %p1242_p2 = pnand %p1240_p1, %p1237_p0 }
   0xb   :  { %1245 = shalt.err (!%p1242_p2)
}
   0xc   :  { %s1246_s8 = scalar_lea.vmem %s24_s12, 256  ;;  %s1250_s20 = scalar_lea.vmem %s24_s12, 4096 }
   0xd   :  { %p1247_p3 = scmp.ne.s32.totalorder %s24_s12, %s1246_s8  ;;  %p1251_p4 = scmp.lt.s32.totalorder %s24_s12, %s24_s12 }
   0xe   :  { %p1252_p5 = scmp.lt.s32.totalorder %s1250_s20, %s1246_s8 }
  0x10   :  { %p1253_p6 = por %p1252_p5, %p1251_p4 }
  0x12   :  { %p1254_p7 = pnand %p1253_p6, %p1247_p3 }
  0x14   :  { %1257 = shalt.err (!%p1254_p7)
}
  0x15   :  { %s1285_s21 = smov 256   ;;  %s1286_s22 = smov 16  }
  0x16   :  { %29 = dma.hbm_to_vmem [thread:$0]  %s1625_s0, 256, %s24_s12, [#allocation4], %s1285_s21, %s1285_s21, %s1286_s22  }
  0x17   :  { %1280 = dma.done.wait [#allocation4], 4096  }
  0x18   :  { %1281 = vsyncadd [#allocation4], 4294963200  ;;  %v161_v1 = vld [vmem:[%s1626_s1 + $0x80] sm:$0xff]  ;;  %v162_v2 = vld [vmem:[%s1626_s1 + $0x88] sm:$0xff]  ;;  %vm576_vm0 = vcmask 523264  }
  0x19   :  { %v145_v3 = vld [vmem:[%s1626_s1] sm:$0xff]  ;;  %v1149_v4 = vpack.c.bf16 %v162_v2, %v161_v1  ;;  %v146_v5 = vld [vmem:[%s1626_s1 + $0x8] sm:$0xff]  ;;  %v163_v6 = vld [vmem:[%s1626_s1 + $0x90] sm:$0xff] }
  0x1a   :  { %v164_v7 = vld [vmem:[%s1626_s1 + $0x98] sm:$0xff]  ;;  %v1151_v8 = vpack.c.bf16 %v146_v5, %v145_v3  ;;  %v147_v10 = vld [vmem:[%s1626_s1 + $0x10] sm:$0xff]  ;;  %v165_v12 = vld [vmem:[%s1626_s1 + $0xa0] sm:$0xff] }
  0x1b   :  { %v1153_v9 = vpack.c.bf16 %v164_v7, %v163_v6  ;;  %v148_v11 = vld [vmem:[%s1626_s1 + $0x18] sm:$0xff]  ;;  %1150 = vmatprep.subr.bf16.mxu0 %v1149_v4  ;;  %v166_v13 = vld [vmem:[%s1626_s1 + $0xa8] sm:$0xff]  ;;  %v149_v16 = vld [vmem:[%s1626_s1 + $0x20] sm:$0xff] }
  0x1c   :  { %1152 = vmatpush3.bf16.msra.mxu0 %v1151_v8  ;;  %v1155_v14 = vpack.c.bf16 %v148_v11, %v147_v10  ;;  %v1157_v15 = vpack.c.bf16 %v166_v13, %v165_v12  ;;  %v150_v17 = vld [vmem:[%s1626_s1 + $0x28] sm:$0xff]  ;;  %v167_v18 = vld [vmem:[%s1626_s1 + $0xb0] sm:$0xff]  ;;  %v168_v19 = vld [vmem:[%s1626_s1 + $0xb8] sm:$0xff] }
  0x1d   :  { %1154 = vmatprep.subr.bf16.mxu0 %v1153_v9  ;;  %v1159_v20 = vpack.c.bf16 %v150_v17, %v149_v16  ;;  %v1161_v21 = vpack.c.bf16 %v168_v19, %v167_v18  ;;  %v151_v22 = vld [vmem:[%s1626_s1 + $0x30] sm:$0xff]  ;;  %v152_v23 = vld [vmem:[%s1626_s1 + $0x38] sm:$0xff]  ;;  %v169_v24 = vld [vmem:[%s1626_s1 + $0xc0] sm:$0xff] }
  0x1e   :  { %v170_v25 = vld [vmem:[%s1626_s1 + $0xc8] sm:$0xff]  ;;  %v1163_v28 = vpack.c.bf16 %v152_v23, %v151_v22  ;;  %v153_v30 = vld [vmem:[%s1626_s1 + $0x40] sm:$0xff]  ;;  %v171_v33 = vld [vmem:[%s1626_s1 + $0xd0] sm:$0xff] }
  0x1f   :  { %v50_v26 = vld [vmem:[#allocation3 + $0x8] sm:$0xff]  ;;  %v1165_v29 = vpack.c.bf16 %v170_v25, %v169_v24  ;;  %v172_v34 = vld [vmem:[%s1626_s1 + $0xd8] sm:$0xff]  ;;  %v173_v39 = vld [vmem:[%s1626_s1 + $0xe0] sm:$0xff] }
  0x20   :  { %1156 = vmatpush3.bf16.msra.mxu0 %v1155_v14  ;;  %v82_v27 = vmul.f32 0.1, %v50_v26  ;;  %v154_v31 = vld [vmem:[%s1626_s1 + $0x48] sm:$0xff]  ;;  %v1169_v36 = vpack.c.bf16 %v172_v34, %v171_v33  ;;  %v155_v37 = vld [vmem:[%s1626_s1 + $0x50] sm:$0xff]  ;;  %v156_v38 = vld [vmem:[%s1626_s1 + $0x58] sm:$0xff] }
  0x21   :  { %1158 = vmatprep.subr.bf16.mxu0 %v1157_v15  ;;  %v1167_v35 = vpack.c.bf16 %v154_v31, %v153_v30  ;;  %v174_v40 = vld [vmem:[%s1626_s1 + $0xe8] sm:$0xff]  ;;  %v1171_v41 = vpack.c.bf16 %v156_v38, %v155_v37  ;;  %v157_v43 = vld [vmem:[%s1626_s1 + $0x60] sm:$0xff]  ;;  %v175_v45 = vld [vmem:[%s1626_s1 + $0xf0] sm:$0xff] }
  0x22   :  { %v114_v32 = vmax.f32 %v50_v26, %v82_v27  ;;  %v1173_v42 = vpack.c.bf16 %v174_v40, %v173_v39  ;;  %v158_v44 = vld [vmem:[%s1626_s1 + $0x68] sm:$0xff]  ;;  %v176_v46 = vld [vmem:[%s1626_s1 + $0xf8] sm:$0xff]  ;;  %v159_v50 = vld [vmem:[%s1626_s1 + $0x70] sm:$0xff] }
  0x23   :  { %v1175_v47 = vpack.c.bf16 %v158_v44, %v157_v43  ;;  %v49_v48 = vld [vmem:[#allocation3] sm:$0xff]  ;;  %v1177_v49 = vpack.c.bf16 %v176_v46, %v175_v45  ;;  %v160_v51 = vld [vmem:[%s1626_s1 + $0x78] sm:$0xff]  ;;  %v363_v59 = vld [vmem:[%s1628_s3 + $0x10] sm:$0xff] }
  0x24   :  { %1160 = vmatpush3.bf16.msra.mxu0 %v1159_v20  ;;  %248 = vmatprep.mubr.f32.mxu0 %v114_v32  ;;  %v52_v52 = vld [vmem:[#allocation3 + $0x18] sm:$0xff]  ;;  %v81_v53 = vmul.f32 0.1, %v49_v48  ;;  %v51_v54 = vld [vmem:[#allocation3 + $0x10] sm:$0xff]  ;;  %v1179_v56 = vpack.c.bf16 %v160_v51, %v159_v50  ;;  %v362_v58 = vld [vmem:[%s1628_s3 + $0x8] sm:$0xff] }
  0x25   :  { %1162 = vmatprep.subr.bf16.mxu0 %v1161_v21  ;;  %v361_v55 = vld [vmem:[%s1628_s3] sm:$0xff]  ;;  %v84_v57 = vmul.f32 0.1, %v52_v52  ;;  %v364_v60 = vld [vmem:[%s1628_s3 + $0x18] sm:$0xff]  ;;  %v54_v61 = vld [vmem:[#allocation3 + $0x28] sm:$0xff] }
  0x26   :  { %v1181_v62 = vpack.c.bf16 %v362_v58, %v361_v55  ;;  %v1185_v63 = vpack.c.bf16 %v364_v60, %v363_v59  ;;  %v365_v0 = vld [vmem:[%s1628_s3 + $0x20] sm:$0xff]  ;;  %v366_v1 = vld [vmem:[%s1628_s3 + $0x28] sm:$0xff]  ;;  %v113_v2 = vmax.f32 %v49_v48, %v81_v53  ;;  %v83_v3 = vmul.f32 0.1, %v51_v54  ;;  %v367_v9 = vld [vmem:[%s1628_s3 + $0x30] sm:$0xff] }
  0x27   :  { %v116_v4 = vmax.f32 %v52_v52, %v84_v57  ;;  %v86_v5 = vmul.f32 0.1, %v54_v61  ;;  %v53_v6 = vld [vmem:[#allocation3 + $0x20] sm:$0xff]  ;;  %v56_v7 = vld [vmem:[#allocation3 + $0x38] sm:$0xff]  ;;  %v1189_v8 = vpack.c.bf16 %v366_v1, %v365_v0  ;;  %v55_v15 = vld [vmem:[#allocation3 + $0x30] sm:$0xff] }
  0x28   :  { %1164 = vmatpush3.bf16.msra.mxu0 %v1163_v28  ;;  %1182 = vmatprep.subr.bf16.mxu1 %v1181_v62  ;;  %v368_v10 = vld [vmem:[%s1628_s3 + $0x38] sm:$0xff]  ;;  %v115_v11 = vmax.f32 %v51_v54, %v83_v3  ;;  %v85_v12 = vmul.f32 0.1, %v53_v6  ;;  %v88_v14 = vmul.f32 0.1, %v56_v7  ;;  %v58_v16 = vld [vmem:[#allocation3 + $0x48] sm:$0xff] }
  0x29   :  { %1166 = vmatprep.subr.bf16.mxu0 %v1165_v29  ;;  %1184 = vmatpush3.bf16.msra.mxu1 %v1181_v62  ;;  %v118_v13 = vmax.f32 %v54_v61, %v86_v5  ;;  %v1193_v17 = vpack.c.bf16 %v368_v10, %v367_v9  ;;  %v369_v18 = vld [vmem:[%s1628_s3 + $0x40] sm:$0xff]  ;;  %v370_v19 = vld [vmem:[%s1628_s3 + $0x48] sm:$0xff]  ;;  %v87_v21 = vmul.f32 0.1, %v55_v15  ;;  %v90_v23 = vmul.f32 0.1, %v58_v16 }
  0x2a   :  { %1186 = vmatprep.subr.bf16.mxu1 %v1185_v63  ;;  %v117_v20 = vmax.f32 %v53_v6, %v85_v12  ;;  %v120_v22 = vmax.f32 %v56_v7, %v88_v14  ;;  %v57_v24 = vld [vmem:[#allocation3 + $0x40] sm:$0xff]  ;;  %v60_v25 = vld [vmem:[#allocation3 + $0x58] sm:$0xff]  ;;  %v1197_v26 = vpack.c.bf16 %v370_v19, %v369_v18  ;;  %v59_v31 = vld [vmem:[#allocation3 + $0x50] sm:$0xff] }
  0x2b   :  { %v119_v27 = vmax.f32 %v55_v15, %v87_v21  ;;  %v89_v28 = vmul.f32 0.1, %v57_v24  ;;  %v122_v29 = vmax.f32 %v58_v16, %v90_v23  ;;  %v92_v30 = vmul.f32 0.1, %v60_v25  ;;  %v62_v32 = vld [vmem:[#allocation3 + $0x68] sm:$0xff]  ;;  %v61_v37 = vld [vmem:[#allocation3 + $0x60] sm:$0xff] }
  0x2c   :  { %1168 = vmatpush3.bf16.msra.mxu0 %v1167_v35  ;;  %v91_v34 = vmul.f32 0.1, %v59_v31  ;;  %v64_v38 = vld [vmem:[#allocation3 + $0x78] sm:$0xff]  ;;  %v93_v40 = vmul.f32 0.1, %v61_v37  ;;  %v63_v43 = vld [vmem:[#allocation3 + $0x70] sm:$0xff] }
  0x2d   :  { %1170 = vmatprep.subr.bf16.mxu0 %v1169_v36  ;;  %1188 = vmatpush3.bf16.msra.mxu1 %v1185_v63  ;;  %v121_v33 = vmax.f32 %v57_v24, %v89_v28  ;;  %v124_v35 = vmax.f32 %v60_v25, %v92_v30  ;;  %v94_v36 = vmul.f32 0.1, %v62_v32  ;;  %v66_v44 = vld [vmem:[#allocation3 + $0x88] sm:$0xff]  ;;  %v95_v46 = vmul.f32 0.1, %v63_v43  ;;  %v68_v50 = vld [vmem:[#allocation3 + $0x98] sm:$0xff] }
  0x2e   :  { %1190 = vmatprep.subr.bf16.mxu1 %v1189_v8  ;;  %v123_v39 = vmax.f32 %v59_v31, %v91_v34  ;;  %v125_v45 = vmax.f32 %v61_v37, %v93_v40  ;;  %v98_v48 = vmul.f32 0.1, %v66_v44  ;;  %v100_v54 = vmul.f32 0.1, %v68_v50  ;;  %v67_v55 = vld [vmem:[#allocation3 + $0x90] sm:$0xff]  ;;  %v69_v61 = vld [vmem:[#allocation3 + $0xa0] sm:$0xff] }
  0x2f   :  { %v127_v51 = vmax.f32 %v63_v43, %v95_v46  ;;  %v99_v58 = vmul.f32 0.1, %v67_v55  ;;  %v72_v62 = vld [vmem:[#allocation3 + $0xb8] sm:$0xff]  ;;  %v101_v0 = vmul.f32 0.1, %v69_v61  ;;  %v71_v3 = vld [vmem:[#allocation3 + $0xb0] sm:$0xff] }
  0x30   :  { %1172 = vmatpush3.bf16.msra.mxu0 %v1171_v41  ;;  %v126_v41 = vmax.f32 %v62_v32, %v94_v36  ;;  %v130_v53 = vmax.f32 %v66_v44, %v98_v48  ;;  %v132_v59 = vmax.f32 %v68_v50, %v100_v54  ;;  %v103_v6 = vmul.f32 0.1, %v71_v3  ;;  %v73_v9 = vld [vmem:[#allocation3 + $0xc0] sm:$0xff]  ;;  %v76_v10 = vld [vmem:[#allocation3 + $0xd8] sm:$0xff]  ;;  %v75_v15 = vld [vmem:[#allocation3 + $0xd0] sm:$0xff] }
  0x31   :  { %1174 = vmatprep.subr.bf16.mxu0 %v1173_v42  ;;  %1192 = vmatpush3.bf16.msra.mxu1 %v1189_v8  ;;  %v96_v42 = vmul.f32 0.1, %v64_v38  ;;  %v131_v63 = vmax.f32 %v67_v55, %v99_v58  ;;  %v133_v5 = vmax.f32 %v69_v61, %v101_v0  ;;  %v105_v12 = vmul.f32 0.1, %v73_v9  ;;  %v78_v16 = vld [vmem:[#allocation3 + $0xe8] sm:$0xff]  ;;  %v77_v21 = vld [vmem:[#allocation3 + $0xe0] sm:$0xff] }
  0x32   :  { %1194 = vmatprep.subr.bf16.mxu1 %v1193_v17  ;;  %v108_v14 = vmul.f32 0.1, %v76_v10  ;;  %v107_v18 = vmul.f32 0.1, %v75_v15  ;;  %v109_v24 = vmul.f32 0.1, %v77_v21 }
  0x33   :  { %v371_v32 = vld [vmem:[%s1628_s3 + $0x50] sm:$0xff]  ;;  %v374_v36 = vld [vmem:[%s1628_s3 + $0x68] sm:$0xff]  ;;  %v1507_v46 = vld [vmem:[%s1627_s2] ss:$0 sm:$0xff] }
  0x34   :  { %1176 = vmatpush3.bf16.msra.mxu0 %v1175_v47  ;;  %v128_v47 = vmax.f32 %v64_v38, %v96_v42  ;;  %v140_v19 = vmax.f32 %v76_v10, %v108_v14  ;;  %v139_v23 = vmax.f32 %v75_v15, %v107_v18  ;;  %v141_v28 = vmax.f32 %v77_v21, %v109_v24  ;;  %v375_v38 = vld [vmem:[%s1628_s3 + $0x70] sm:$0xff]  ;;  %v562_v42 = vld [vmem:[%s1630_s5 + $0x8] sm:$0xff]  ;;  %v564_v58 = vld [vmem:[%s1630_s5 + $0x18] sm:$0xff] }
  0x35   :  { %1178 = vmatprep.subr.bf16.mxu0 %v1177_v49  ;;  %1196 = vmatpush3.bf16.msra.mxu1 %v1193_v17  ;;  %v65_v49 = vld [vmem:[#allocation3 + $0x80] sm:$0xff]  ;;  %v137_v17 = vmax.f32 %v73_v9, %v105_v12 }
  0x36   :  { %1198 = vmatprep.subr.bf16.mxu1 %v1197_v26  ;;  %v97_v52 = vmul.f32 0.1, %v65_v49 }
  0x38   :  { %1180 = vmatpush3.bf16.msra.mxu0 %v1179_v56  ;;  %v70_v56 = vld [vmem:[#allocation3 + $0xa8] sm:$0xff]  ;;  %v129_v57 = vmax.f32 %v65_v49, %v97_v52 }
  0x39   :  { %1200 = vmatpush3.bf16.msra.mxu1 %v1197_v26  ;;  %v102_v60 = vmul.f32 0.1, %v70_v56 }
  0x3b   :  { %249 = vmatmul.mubr.f32.vlgmr.msra.gmra.mrb[0].mxu0 %v113_v2  ;;  %v134_v1 = vmax.f32 %v70_v56, %v102_v60  ;;  %v104_v2 = vmul.f32 0.1, %v72_v62 }
  0x3c   :  { %253 = vmatprep.mubr.f32.mxu0 %v116_v4  ;;  %v74_v4 = vld [vmem:[#allocation3 + $0xc8] sm:$0xff] }
  0x3d   :  { %v136_v7 = vmax.f32 %v72_v62, %v104_v2  ;;  %v106_v8 = vmul.f32 0.1, %v74_v4  ;;  %v565_v2 = vld [vmem:[%s1630_s5 + $0x20] sm:$0xff] }
  0x3f   :  { %254 = vmatmul.mubr.f32.gmra.mrb[2].mxu0 %v115_v11  ;;  %v135_v11 = vmax.f32 %v71_v3, %v103_v6  ;;  %v566_v3 = vld [vmem:[%s1630_s5 + $0x28] sm:$0xff] }
  0x40   :  { %258 = vmatprep.mubr.f32.mxu0 %v118_v13  ;;  %v138_v13 = vmax.f32 %v74_v4, %v106_v8  ;;  %v1221_v9 = vpack.c.bf16 %v566_v3, %v565_v2 }
  0x43   :  { %259 = vmatmul.mubr.f32.gmra.mrb[4].mxu0 %v117_v20  ;;  %v110_v20 = vmul.f32 0.1, %v78_v16 }
  0x44   :  { %263 = vmatprep.mubr.f32.mxu0 %v120_v22  ;;  %v80_v22 = vld [vmem:[#allocation3 + $0xf8] sm:$0xff] }
  0x45   :  { %v142_v25 = vmax.f32 %v78_v16, %v110_v20  ;;  %v112_v26 = vmul.f32 0.1, %v80_v22 }
  0x47   :  { %264 = vmatmul.mubr.f32.gmra.mrb[6].mxu0 %v119_v27  ;;  %v79_v27 = vld [vmem:[#allocation3 + $0xf0] sm:$0xff]  ;;  %v144_v30 = vmax.f32 %v80_v22, %v112_v26 }
  0x48   :  { %268 = vmatprep.mubr.f32.mxu0 %v122_v29  ;;  %v111_v29 = vmul.f32 0.1, %v79_v27 }
  0x4a   :  { %v143_v31 = vmax.f32 %v79_v27, %v111_v29 }
  0x4b   :  { %269 = vmatmul.mubr.f32.gmra.mrb[8].mxu0 %v121_v33  ;;  %v372_v33 = vld [vmem:[%s1628_s3 + $0x58] sm:$0xff] }
  0x4c   :  { %273 = vmatprep.mubr.f32.mxu0 %v124_v35  ;;  %v1201_v34 = vpack.c.bf16 %v372_v33, %v371_v32  ;;  %v373_v35 = vld [vmem:[%s1628_s3 + $0x60] sm:$0xff] }
  0x4d   :  { %v1205_v37 = vpack.c.bf16 %v374_v36, %v373_v35 }
  0x4e   :  { %1202 = vmatprep.subr.bf16.mxu1 %v1201_v34 }
  0x4f   :  { %274 = vmatmul.mubr.f32.gmra.mrb[10].mxu0 %v123_v39  ;;  %1204 = vmatpush3.bf16.msra.mxu1 %v1201_v34  ;;  %v376_v39 = vld [vmem:[%s1628_s3 + $0x78] sm:$0xff] }
  0x50   :  { %278 = vmatprep.mubr.f32.mxu0 %v126_v41  ;;  %1206 = vmatprep.subr.bf16.mxu1 %v1205_v37  ;;  %v1209_v40 = vpack.c.bf16 %v376_v39, %v375_v38  ;;  %v561_v41 = vld [vmem:[%s1630_s5] sm:$0xff] }
  0x51   :  { %v1213_v43 = vpack.c.bf16 %v562_v42, %v561_v41 }
  0x53   :  { %279 = vmatmul.mubr.f32.gmra.mrb[12].mxu0 %v125_v45  ;;  %1208 = vmatpush3.bf16.msra.mxu1 %v1205_v37 }
  0x54   :  { %283 = vmatprep.mubr.f32.mxu0 %v128_v47  ;;  %1210 = vmatprep.subr.bf16.mxu1 %v1209_v40 }
  0x57   :  { %284 = vmatmul.mubr.f32.gmra.mrb[14].mxu0 %v127_v51  ;;  %1212 = vmatpush3.bf16.msra.mxu1 %v1209_v40 }
  0x58   :  { %288 = vmatprep.mubr.f32.mxu0 %v130_v53  ;;  %1214 = vmatprep.subr.bf16.mxu1 %v1213_v43 }
  0x5b   :  { %289 = vmatmul.mubr.f32.gmra.mrb[16].mxu0 %v129_v57  ;;  %v563_v57 = vld [vmem:[%s1630_s5 + $0x10] sm:$0xff] }
  0x5c   :  { %293 = vmatprep.mubr.f32.mxu0 %v132_v59  ;;  %v1217_v0 = vpack.c.bf16 %v564_v58, %v563_v57 }
  0x5f   :  { %294 = vmatmul.mubr.f32.gmra.mrb[18].mxu0 %v131_v63 }
  0x60   :  { %298 = vmatprep.mubr.f32.mxu0 %v134_v1 }
  0x63   :  { %299 = vmatmul.mubr.f32.gmra.mrb[20].mxu0 %v133_v5 }
  0x64   :  { %303 = vmatprep.mubr.f32.mxu0 %v136_v7 }
  0x67   :  { %304 = vmatmul.mubr.f32.gmra.mrb[22].mxu0 %v135_v11 }
  0x68   :  { %308 = vmatprep.mubr.f32.mxu0 %v138_v13 }
  0x6b   :  { %309 = vmatmul.mubr.f32.gmra.mrb[24].mxu0 %v137_v17 }
  0x6c   :  { %313 = vmatprep.mubr.f32.mxu0 %v140_v19 }
  0x6f   :  { %314 = vmatmul.mubr.f32.gmra.mrb[26].mxu0 %v139_v23 }
  0x70   :  { %318 = vmatprep.mubr.f32.mxu0 %v142_v25 }
  0x73   :  { %319 = vmatmul.mubr.f32.gmra.mrb[28].mxu0 %v141_v28 }
  0x74   :  { %323 = vmatprep.mubr.f32.mxu0 %v144_v30 }
  0x77   :  { %324 = vmatmul.mubr.f32.gmra.mrb[30].mxu0 %v143_v31 }
 0x10e   :  { %v949_v44 = vpop.f32.mrb[0].mxu0 }
 0x10f   :  { %v950_v45 = vpop.f32.mrb[1].mxu0 }
 0x110   :  { %v951_v47 = vadd.f32 %v950_v45, %v949_v44 }
 0x112   :  { %v952_v48 = vpop.f32.mrb[2].mxu0  ;;  %v251_v49 = vadd.f32 %v951_v47, %v1507_v46 }
 0x113   :  { %v953_v50 = vpop.f32.mrb[3].mxu0 }
 0x114   :  { %v954_v51 = vadd.f32 %v953_v50, %v952_v48  ;;  %v329_v52 = vmul.f32 0.1, %v251_v49 }
 0x116   :  { %v256_v53 = vadd.f32 %v954_v51, %v1507_v46  ;;  %v955_v54 = vpop.f32.mrb[4].mxu0  ;;  %v345_v55 = vmax.f32 %v251_v49, %v329_v52 }
 0x117   :  { %v956_v56 = vpop.f32.mrb[5].mxu0 }
 0x118   :  { %v330_v59 = vmul.f32 0.1, %v256_v53  ;;  %v957_v60 = vadd.f32 %v956_v56, %v955_v54  ;;  %1085 = vmatprep.mubr.f32.mxu1 %v345_v55 }
 0x11a   :  { %v261_v61 = vadd.f32 %v957_v60, %v1507_v46  ;;  %v958_v62 = vpop.f32.mrb[6].mxu0  ;;  %v346_v63 = vmax.f32 %v256_v53, %v330_v59 }
 0x11b   :  { %v959_v1 = vpop.f32.mrb[7].mxu0 }
 0x11c   :  { %v331_v4 = vmul.f32 0.1, %v261_v61  ;;  %v960_v5 = vadd.f32 %v959_v1, %v958_v62  ;;  %1086 = vmatmul.mubr.f32.vlgmr.msra.gmra.mrb[0].mxu1 %v346_v63 }
 0x11d   :  { %1216 = vmatpush3.bf16.msra.mxu1 %v1213_v43 }
 0x11e   :  { %v266_v6 = vadd.f32 %v960_v5, %v1507_v46  ;;  %v961_v7 = vpop.f32.mrb[8].mxu0  ;;  %v347_v8 = vmax.f32 %v261_v61, %v331_v4  ;;  %1218 = vmatprep.subr.bf16.mxu1 %v1217_v0 }
 0x11f   :  { %v962_v10 = vpop.f32.mrb[9].mxu0 }
 0x120   :  { %v332_v11 = vmul.f32 0.1, %v266_v6  ;;  %v963_v12 = vadd.f32 %v962_v10, %v961_v7  ;;  %1088 = vmatprep.mubr.f32.mxu1 %v347_v8 }
 0x121   :  { %1220 = vmatpush3.bf16.msra.mxu1 %v1217_v0 }
 0x122   :  { %v271_v13 = vadd.f32 %v963_v12, %v1507_v46  ;;  %v964_v14 = vpop.f32.mrb[10].mxu0  ;;  %v348_v15 = vmax.f32 %v266_v6, %v332_v11  ;;  %1222 = vmatprep.subr.bf16.mxu1 %v1221_v9 }
 0x123   :  { %v965_v16 = vpop.f32.mrb[11].mxu0 }
 0x124   :  { %v333_v17 = vmul.f32 0.1, %v271_v13  ;;  %v966_v18 = vadd.f32 %v965_v16, %v964_v14  ;;  %1089 = vmatmul.mubr.f32.gmra.mrb[2].mxu1 %v348_v15 }
 0x125   :  { %1224 = vmatpush3.bf16.msra.mxu1 %v1221_v9 }
 0x126   :  { %v276_v19 = vadd.f32 %v966_v18, %v1507_v46  ;;  %v967_v20 = vpop.f32.mrb[12].mxu0  ;;  %v349_v21 = vmax.f32 %v271_v13, %v333_v17 }
 0x127   :  { %v968_v22 = vpop.f32.mrb[13].mxu0 }
 0x128   :  { %v334_v23 = vmul.f32 0.1, %v276_v19  ;;  %v969_v24 = vadd.f32 %v968_v22, %v967_v20  ;;  %1091 = vmatprep.mubr.f32.mxu1 %v349_v21  ;;  %v567_v20 = vld [vmem:[%s1630_s5 + $0x30] sm:$0xff]  ;;  %v568_v21 = vld [vmem:[%s1630_s5 + $0x38] sm:$0xff] }
 0x129   :  { %v1225_v22 = vpack.c.bf16 %v568_v21, %v567_v20 }
 0x12a   :  { %v281_v25 = vadd.f32 %v969_v24, %v1507_v46  ;;  %v970_v26 = vpop.f32.mrb[14].mxu0  ;;  %v350_v27 = vmax.f32 %v276_v19, %v334_v23  ;;  %v1287_v23 = vmov 0   ;;  %v837_v24 = vld [vmem:[%s1632_s7 + $0x18] sm:$0xff] }
 0x12b   :  { %v971_v28 = vpop.f32.mrb[15].mxu0  ;;  %1226 = vmatprep.subr.bf16.mxu1 %v1225_v22  ;;  %1235 = vset.pattern.permute.xlu1 %v1287_v23 }
 0x12c   :  { %v335_v29 = vmul.f32 0.1, %v281_v25  ;;  %v972_v30 = vadd.f32 %v971_v28, %v970_v26  ;;  %1092 = vmatmul.mubr.f32.gmra.mrb[4].mxu1 %v350_v27  ;;  %1234 = vset.pattern.permute.xlu0 %v1287_v23 }
 0x12d   :  { %1228 = vmatpush3.bf16.msra.mxu1 %v1225_v22 }
 0x12e   :  { %v286_v31 = vadd.f32 %v972_v30, %v1507_v46  ;;  %v973_v32 = vpop.f32.mrb[16].mxu0  ;;  %v351_v33 = vmax.f32 %v281_v25, %v335_v29  ;;  %v1552_v25 = vld [vmem:[%s1629_s4] ss:$0 sm:$0xff] }
 0x12f   :  { %v974_v34 = vpop.f32.mrb[17].mxu0 }
 0x130   :  { %v336_v35 = vmul.f32 0.1, %v286_v31  ;;  %v975_v36 = vadd.f32 %v974_v34, %v973_v32  ;;  %1094 = vmatprep.mubr.f32.mxu1 %v351_v33 }
 0x132   :  { %v291_v37 = vadd.f32 %v975_v36, %v1507_v46  ;;  %v976_v38 = vpop.f32.mrb[18].mxu0  ;;  %v352_v39 = vmax.f32 %v286_v31, %v336_v35 }
 0x133   :  { %v977_v40 = vpop.f32.mrb[19].mxu0 }
 0x134   :  { %v337_v41 = vmul.f32 0.1, %v291_v37  ;;  %v978_v42 = vadd.f32 %v977_v40, %v976_v38  ;;  %1095 = vmatmul.mubr.f32.gmra.mrb[6].mxu1 %v352_v39 }
 0x136   :  { %v296_v43 = vadd.f32 %v978_v42, %v1507_v46  ;;  %v979_v44 = vpop.f32.mrb[20].mxu0  ;;  %v353_v45 = vmax.f32 %v291_v37, %v337_v41 }
 0x137   :  { %v980_v47 = vpop.f32.mrb[21].mxu0 }
 0x138   :  { %v338_v48 = vmul.f32 0.1, %v296_v43  ;;  %v981_v49 = vadd.f32 %v980_v47, %v979_v44  ;;  %1097 = vmatprep.mubr.f32.mxu1 %v353_v45 }
 0x13a   :  { %v301_v50 = vadd.f32 %v981_v49, %v1507_v46  ;;  %v982_v51 = vpop.f32.mrb[22].mxu0  ;;  %v354_v52 = vmax.f32 %v296_v43, %v338_v48 }
 0x13b   :  { %v983_v53 = vpop.f32.mrb[23].mxu0 }
 0x13c   :  { %v339_v54 = vmul.f32 0.1, %v301_v50  ;;  %v984_v55 = vadd.f32 %v983_v53, %v982_v51  ;;  %1098 = vmatmul.mubr.f32.gmra.mrb[8].mxu1 %v354_v52 }
 0x13e   :  { %v306_v56 = vadd.f32 %v984_v55, %v1507_v46  ;;  %v985_v57 = vpop.f32.mrb[24].mxu0  ;;  %v355_v58 = vmax.f32 %v301_v50, %v339_v54 }
 0x13f   :  { %v986_v59 = vpop.f32.mrb[25].mxu0 }
 0x140   :  { %v340_v60 = vmul.f32 0.1, %v306_v56  ;;  %v987_v61 = vadd.f32 %v986_v59, %v985_v57  ;;  %1100 = vmatprep.mubr.f32.mxu1 %v355_v58 }
 0x142   :  { %v311_v62 = vadd.f32 %v987_v61, %v1507_v46  ;;  %v988_v63 = vpop.f32.mrb[26].mxu0  ;;  %v356_v0 = vmax.f32 %v306_v56, %v340_v60 }
 0x143   :  { %v989_v1 = vpop.f32.mrb[27].mxu0 }
 0x144   :  { %v341_v2 = vmul.f32 0.1, %v311_v62  ;;  %v990_v3 = vadd.f32 %v989_v1, %v988_v63  ;;  %1101 = vmatmul.mubr.f32.gmra.mrb[10].mxu1 %v356_v0 }
 0x146   :  { %v316_v4 = vadd.f32 %v990_v3, %v1507_v46  ;;  %v991_v5 = vpop.f32.mrb[28].mxu0  ;;  %v357_v6 = vmax.f32 %v311_v62, %v341_v2 }
 0x147   :  { %v992_v7 = vpop.f32.mrb[29].mxu0 }
 0x148   :  { %v342_v8 = vmul.f32 0.1, %v316_v4  ;;  %v993_v9 = vadd.f32 %v992_v7, %v991_v5  ;;  %1103 = vmatprep.mubr.f32.mxu1 %v357_v6 }
 0x14a   :  { %v321_v10 = vadd.f32 %v993_v9, %v1507_v46  ;;  %v994_v11 = vpop.f32.mrb[30].mxu0  ;;  %v358_v12 = vmax.f32 %v316_v4, %v342_v8 }
 0x14b   :  { %v995_v13 = vpop.f32.mrb[31].mxu0 }
 0x14c   :  { %v343_v14 = vmul.f32 0.1, %v321_v10  ;;  %v996_v15 = vadd.f32 %v995_v13, %v994_v11  ;;  %1104 = vmatmul.mubr.f32.gmra.mrb[12].mxu1 %v358_v12 }
 0x14e   :  { %v326_v16 = vadd.f32 %v996_v15, %v1507_v46  ;;  %v359_v17 = vmax.f32 %v321_v10, %v343_v14  ;;  %v836_v46 = vld [vmem:[%s1632_s7 + $0x10] sm:$0xff] }
 0x14f   :  { %850 = vperm.xlu1 %1235, %v836_v46  }
 0x150   :  { %v344_v18 = vmul.f32 0.1, %v326_v16  ;;  %1106 = vmatprep.mubr.f32.mxu1 %v359_v17 }
 0x152   :  { %v360_v19 = vmax.f32 %v326_v16, %v344_v18 }
 0x153   :  { %855 = vperm.xlu1 %1235, %v837_v24  }
 0x154   :  { %1107 = vmatmul.mubr.f32.gmra.mrb[14].mxu1 %v360_v19 }
 0x1ef   :  { %v1087_v26 = vpop.f32.mrb[0].mxu1 }
 0x1f0   :  { %v456_v27 = vadd.f32 %v1087_v26, %v1552_v25  ;;  %v450_v28 = vpop.f32.mrb[1].mxu1 }
 0x1f1   :  { %v451_v29 = vadd.f32 %v1552_v25, %v450_v28  ;;  %v835_v28 = vld [vmem:[%s1632_s7 + $0x8] sm:$0xff] }
 0x1f2   :  { %v530_v30 = vmul.f32 0.1, %v456_v27 }
 0x1f3   :  { %v529_v31 = vmul.f32 0.1, %v451_v29 }
 0x1f4   :  { %v546_v33 = vmax.f32 %v456_v27, %v530_v30  ;;  %v834_v27 = vld [vmem:[%s1632_s7] sm:$0xff] }
 0x1f5   :  { %v545_v32 = vmax.f32 %v451_v29, %v529_v31  ;;  %840 = vperm.xlu0 %1234, %v834_v27   ;;  %v871_v29 = vld [vmem:[#allocation2] sm:$0x1] }
 0x1f7   :  { %v1090_v34 = vpop.f32.mrb[2].mxu1  ;;  %1125 = vmatprep.mubr.msk.f32.mxu1 %vm576_vm0, %v545_v32 }
 0x1f8   :  { %v466_v35 = vadd.f32 %v1090_v34, %v1552_v25  ;;  %v460_v36 = vpop.f32.mrb[3].mxu1  ;;  %1126 = vmatmul.mubr.msk.f32.vlgmr.msra.gmra.mrb[16].mxu1 %vm576_vm0, %v546_v33 }
 0x1f9   :  { %v461_v37 = vadd.f32 %v1552_v25, %v460_v36  ;;  %845 = vperm.xlu0 %1234, %v835_v28  }
 0x1fa   :  { %v532_v38 = vmul.f32 0.1, %v466_v35 }
 0x1fb   :  { %v531_v39 = vmul.f32 0.1, %v461_v37 }
 0x1fc   :  { %v548_v41 = vmax.f32 %v466_v35, %v532_v38 }
 0x1fd   :  { %v547_v40 = vmax.f32 %v461_v37, %v531_v39  ;;  %874 = vperm.xlu0 %1234, %v871_v29  }
 0x1ff   :  { %v1093_v42 = vpop.f32.mrb[4].mxu1  ;;  %1128 = vmatprep.mubr.msk.f32.mxu1 %vm576_vm0, %v547_v40 }
 0x200   :  { %v476_v43 = vadd.f32 %v1093_v42, %v1552_v25  ;;  %v470_v44 = vpop.f32.mrb[5].mxu1  ;;  %1129 = vmatmul.mubr.msk.f32.gmra.mrb[18].mxu1 %vm576_vm0, %v548_v41 }
 0x201   :  { %v471_v45 = vadd.f32 %v1552_v25, %v470_v44 }
 0x202   :  { %v534_v47 = vmul.f32 0.1, %v476_v43 }
 0x203   :  { %v533_v48 = vmul.f32 0.1, %v471_v45 }
 0x204   :  { %v550_v50 = vmax.f32 %v476_v43, %v534_v47 }
 0x205   :  { %v549_v49 = vmax.f32 %v471_v45, %v533_v48 }
 0x207   :  { %v1096_v51 = vpop.f32.mrb[6].mxu1  ;;  %1131 = vmatprep.mubr.msk.f32.mxu1 %vm576_vm0, %v549_v49 }
 0x208   :  { %v486_v52 = vadd.f32 %v1096_v51, %v1552_v25  ;;  %v480_v53 = vpop.f32.mrb[7].mxu1  ;;  %1132 = vmatmul.mubr.msk.f32.gmra.mrb[20].mxu1 %vm576_vm0, %v550_v50 }
 0x209   :  { %v481_v54 = vadd.f32 %v1552_v25, %v480_v53 }
 0x20a   :  { %v536_v55 = vmul.f32 0.1, %v486_v52 }
 0x20b   :  { %v535_v56 = vmul.f32 0.1, %v481_v54 }
 0x20c   :  { %v552_v58 = vmax.f32 %v486_v52, %v536_v55 }
 0x20d   :  { %v551_v57 = vmax.f32 %v481_v54, %v535_v56 }
 0x20f   :  { %v1099_v59 = vpop.f32.mrb[8].mxu1  ;;  %1134 = vmatprep.mubr.msk.f32.mxu1 %vm576_vm0, %v551_v57 }
 0x210   :  { %v496_v60 = vadd.f32 %v1099_v59, %v1552_v25  ;;  %v490_v61 = vpop.f32.mrb[9].mxu1  ;;  %1135 = vmatmul.mubr.msk.f32.gmra.mrb[22].mxu1 %vm576_vm0, %v552_v58 }
 0x211   :  { %v491_v62 = vadd.f32 %v1552_v25, %v490_v61 }
 0x212   :  { %v538_v63 = vmul.f32 0.1, %v496_v60 }
 0x213   :  { %v537_v0 = vmul.f32 0.1, %v491_v62 }
 0x214   :  { %v554_v2 = vmax.f32 %v496_v60, %v538_v63 }
 0x215   :  { %v553_v1 = vmax.f32 %v491_v62, %v537_v0 }
 0x217   :  { %v1102_v3 = vpop.f32.mrb[10].mxu1  ;;  %1137 = vmatprep.mubr.msk.f32.mxu1 %vm576_vm0, %v553_v1 }
 0x218   :  { %v506_v4 = vadd.f32 %v1102_v3, %v1552_v25  ;;  %v500_v5 = vpop.f32.mrb[11].mxu1  ;;  %1138 = vmatmul.mubr.msk.f32.gmra.mrb[24].mxu1 %vm576_vm0, %v554_v2 }
 0x219   :  { %v501_v6 = vadd.f32 %v1552_v25, %v500_v5 }
 0x21a   :  { %v540_v7 = vmul.f32 0.1, %v506_v4 }
 0x21b   :  { %v539_v8 = vmul.f32 0.1, %v501_v6 }
 0x21c   :  { %v556_v10 = vmax.f32 %v506_v4, %v540_v7 }
 0x21d   :  { %v555_v9 = vmax.f32 %v501_v6, %v539_v8 }
 0x21f   :  { %v1105_v11 = vpop.f32.mrb[12].mxu1  ;;  %1140 = vmatprep.mubr.msk.f32.mxu1 %vm576_vm0, %v555_v9 }
 0x220   :  { %v516_v12 = vadd.f32 %v1105_v11, %v1552_v25  ;;  %v510_v13 = vpop.f32.mrb[13].mxu1  ;;  %1141 = vmatmul.mubr.msk.f32.gmra.mrb[26].mxu1 %vm576_vm0, %v556_v10 }
 0x221   :  { %v511_v14 = vadd.f32 %v1552_v25, %v510_v13 }
 0x222   :  { %v542_v15 = vmul.f32 0.1, %v516_v12 }
 0x223   :  { %v541_v16 = vmul.f32 0.1, %v511_v14 }
 0x224   :  { %v558_v18 = vmax.f32 %v516_v12, %v542_v15 }
 0x225   :  { %v557_v17 = vmax.f32 %v511_v14, %v541_v16 }
 0x227   :  { %v1108_v19 = vpop.f32.mrb[14].mxu1  ;;  %1143 = vmatprep.mubr.msk.f32.mxu1 %vm576_vm0, %v557_v17 }
 0x228   :  { %v526_v20 = vadd.f32 %v1108_v19, %v1552_v25  ;;  %v520_v21 = vpop.f32.mrb[15].mxu1  ;;  %1144 = vmatmul.mubr.msk.f32.gmra.mrb[28].mxu1 %vm576_vm0, %v558_v18 }
 0x229   :  { %v521_v22 = vadd.f32 %v1552_v25, %v520_v21  ;;  %v1595_v25 = vld [vmem:[%s1631_s6] ss:$0 sm:$0xff]  ;;  %s1288_s6 = smov [#allocation6]  }
 0x22a   :  { %v544_v46 = vmul.f32 0.1, %v526_v20  ;;  %s889_s7 = sshll.u32 %s1288_s6, 4  ;;  %s890_s7 = int_to_ptr.vmem [resolvable:$true] %s889_s7 }
 0x22b   :  { %v543_v23 = vmul.f32 0.1, %v521_v22  ;;  %s1258_s29 = scalar_lea.vmem %s890_s7, 16  ;;  %s1262_s30 = scalar_lea.vmem %s890_s7, 32 }
 0x22c   :  { %v560_v26 = vmax.f32 %v526_v20, %v544_v46  ;;  %p1259_p8 = scmp.ne.s32.totalorder %s890_s7, %s1258_s29  ;;  %p1263_p9 = scmp.lt.s32.totalorder %s890_s7, %s890_s7 }
 0x22d   :  { %v559_v24 = vmax.f32 %v521_v22, %v543_v23  ;;  %p1264_p10 = scmp.lt.s32.totalorder %s1262_s30, %s1258_s29 }
 0x22f   :  { %1146 = vmatprep.mubr.msk.f32.mxu1 %vm576_vm0, %v559_v24  ;;  %p1265_p11 = por %p1264_p10, %p1263_p9 }
 0x230   :  { %1147 = vmatmul.mubr.msk.f32.gmra.mrb[30].mxu1 %vm576_vm0, %v560_v26 }
 0x231   :  { %p1266_p12 = pnand %p1265_p11, %p1259_p8 }
 0x2cb   :  { %v1127_v30 = vpop.f32.mrb[16].mxu1 }
 0x2cc   :  { %v691_v31 = vpop.f32.mrb[17].mxu1  ;;  %v697_v32 = vadd.f32 %v1127_v30, %v1595_v25 }
 0x2cd   :  { %v692_v33 = vadd.f32 %v1595_v25, %v691_v31  ;;  %v851_v31 = vpop.permute.xlu1 %850 }
 0x2ce   :  { %v771_v35 = vmul.f32 0.1, %v697_v32 }
 0x2cf   :  { %v770_v34 = vmul.f32 0.1, %v692_v33 }
 0x2d0   :  { %v787_v39 = vmax.f32 %v697_v32, %v771_v35 }
 0x2d1   :  { %v786_v36 = vmax.f32 %v692_v33, %v770_v34  ;;  %v856_v32 = vpop.permute.xlu1 %855  ;;  %v841_v33 = vpop.permute.xlu0 %840 }
 0x2d3   :  { %v1130_v37 = vpop.f32.mrb[18].mxu1  ;;  %802 = vxpose.xlu1.b32.start [1/16] (narrow) %v786_v36, 32 }
 0x2d4   :  { %v701_v38 = vpop.f32.mrb[19].mxu1  ;;  %v707_v40 = vadd.f32 %v1130_v37, %v1595_v25 }
 0x2d5   :  { %v702_v41 = vadd.f32 %v1595_v25, %v701_v38  ;;  %v846_v36 = vpop.permute.xlu0 %845 }
 0x2d6   :  { %v773_v43 = vmul.f32 0.1, %v707_v40 }
 0x2d7   :  { %v772_v42 = vmul.f32 0.1, %v702_v41  ;;  %803 = vxpose.xlu1.b32.cont [2/16] (narrow) %v787_v39, 32 }
 0x2d8   :  { %v789_v48 = vmax.f32 %v707_v40, %v773_v43 }
 0x2d9   :  { %v788_v44 = vmax.f32 %v702_v41, %v772_v42 }
 0x2db   :  { %v1133_v45 = vpop.f32.mrb[20].mxu1  ;;  %804 = vxpose.xlu1.b32.cont [3/16] (narrow) %v788_v44, 32  ;;  %v877_v44 = vlaneseq }
 0x2dc   :  { %v711_v47 = vpop.f32.mrb[21].mxu1  ;;  %v717_v49 = vadd.f32 %v1133_v45, %v1595_v25 }
 0x2dd   :  { %v712_v50 = vadd.f32 %v1595_v25, %v711_v47 }
 0x2de   :  { %v775_v52 = vmul.f32 0.1, %v717_v49 }
 0x2df   :  { %v774_v51 = vmul.f32 0.1, %v712_v50  ;;  %805 = vxpose.xlu1.b32.cont [4/16] (narrow) %v789_v48, 32  ;;  %v878_v48 = vshrl.u32 %v877_v44, 7 }
 0x2e0   :  { %v791_v56 = vmax.f32 %v717_v49, %v775_v52 }
 0x2e1   :  { %v790_v53 = vmax.f32 %v712_v50, %v774_v51  ;;  %v879_v51 = vsub.s32 0, %v878_v48 }
 0x2e3   :  { %v1136_v54 = vpop.f32.mrb[22].mxu1  ;;  %806 = vxpose.xlu1.b32.cont [5/16] (narrow) %v790_v53, 32  ;;  %v875_v53 = vpop.permute.xlu0 %874 }
 0x2e4   :  { %v721_v55 = vpop.f32.mrb[23].mxu1  ;;  %v727_v57 = vadd.f32 %v1136_v54, %v1595_v25 }
 0x2e5   :  { %v722_v58 = vadd.f32 %v1595_v25, %v721_v55  ;;  %v880_v55 = vrot.slane %v875_v53, %v879_v51 }
 0x2e6   :  { %v777_v60 = vmul.f32 0.1, %v727_v57 }
 0x2e7   :  { %v776_v59 = vmul.f32 0.1, %v722_v58  ;;  %807 = vxpose.xlu1.b32.cont [6/16] (narrow) %v791_v56, 32 }
 0x2e8   :  { %v793_v0 = vmax.f32 %v727_v57, %v777_v60 }
 0x2e9   :  { %v792_v61 = vmax.f32 %v722_v58, %v776_v59 }
 0x2eb   :  { %v1139_v62 = vpop.f32.mrb[24].mxu1  ;;  %808 = vxpose.xlu1.b32.cont [7/16] (narrow) %v792_v61, 32 }
 0x2ec   :  { %v731_v63 = vpop.f32.mrb[25].mxu1  ;;  %v737_v1 = vadd.f32 %v1139_v62, %v1595_v25 }
 0x2ed   :  { %v732_v2 = vadd.f32 %v1595_v25, %v731_v63 }
 0x2ee   :  { %v779_v4 = vmul.f32 0.1, %v737_v1 }
 0x2ef   :  { %v778_v3 = vmul.f32 0.1, %v732_v2  ;;  %809 = vxpose.xlu1.b32.cont [8/16] (narrow) %v793_v0, 32 }
 0x2f0   :  { %v795_v8 = vmax.f32 %v737_v1, %v779_v4 }
 0x2f1   :  { %v794_v5 = vmax.f32 %v732_v2, %v778_v3 }
 0x2f3   :  { %v1142_v6 = vpop.f32.mrb[26].mxu1  ;;  %810 = vxpose.xlu1.b32.cont [9/16] (narrow) %v794_v5, 32 }
 0x2f4   :  { %v741_v7 = vpop.f32.mrb[27].mxu1  ;;  %v747_v9 = vadd.f32 %v1142_v6, %v1595_v25 }
 0x2f5   :  { %v742_v10 = vadd.f32 %v1595_v25, %v741_v7 }
 0x2f6   :  { %v781_v12 = vmul.f32 0.1, %v747_v9 }
 0x2f7   :  { %v780_v11 = vmul.f32 0.1, %v742_v10  ;;  %811 = vxpose.xlu1.b32.cont [10/16] (narrow) %v795_v8, 32 }
 0x2f8   :  { %v797_v16 = vmax.f32 %v747_v9, %v781_v12 }
 0x2f9   :  { %v796_v13 = vmax.f32 %v742_v10, %v780_v11 }
 0x2fb   :  { %v1145_v14 = vpop.f32.mrb[28].mxu1  ;;  %812 = vxpose.xlu1.b32.cont [11/16] (narrow) %v796_v13, 32 }
 0x2fc   :  { %v751_v15 = vpop.f32.mrb[29].mxu1  ;;  %v757_v17 = vadd.f32 %v1145_v14, %v1595_v25 }
 0x2fd   :  { %v752_v18 = vadd.f32 %v1595_v25, %v751_v15 }
 0x2fe   :  { %v783_v20 = vmul.f32 0.1, %v757_v17 }
 0x2ff   :  { %v782_v19 = vmul.f32 0.1, %v752_v18  ;;  %813 = vxpose.xlu1.b32.cont [12/16] (narrow) %v797_v16, 32 }
 0x300   :  { %v799_v23 = vmax.f32 %v757_v17, %v783_v20 }
 0x301   :  { %v798_v21 = vmax.f32 %v752_v18, %v782_v19 }
 0x303   :  { %v1148_v22 = vpop.f32.mrb[30].mxu1  ;;  %814 = vxpose.xlu1.b32.cont [13/16] (narrow) %v798_v21, 32 }
 0x304   :  { %v761_v46 = vpop.f32.mrb[31].mxu1  ;;  %v767_v24 = vadd.f32 %v1148_v22, %v1595_v25 }
 0x305   :  { %v762_v26 = vadd.f32 %v1595_v25, %v761_v46 }
 0x306   :  { %v785_v28 = vmul.f32 0.1, %v767_v24 }
 0x307   :  { %v784_v27 = vmul.f32 0.1, %v762_v26  ;;  %815 = vxpose.xlu1.b32.cont [14/16] (narrow) %v799_v23, 32 }
 0x308   :  { %v801_v30 = vmax.f32 %v767_v24, %v785_v28 }
 0x309   :  { %v800_v29 = vmax.f32 %v762_v26, %v784_v27 }
 0x30b   :  { %816 = vxpose.xlu1.b32.cont [15/16] (narrow) %v800_v29, 32 }
 0x30f   :  { %817 = vxpose.xlu1.b32.end [16/16] (narrow) %v801_v30, 32 }
 0x353   :  { %v818_v34 = vpop.trf.xlu1 }
 0x354   :  { %v858_v39 = vmul.f32 %v841_v33, %v818_v34 }
 0x357   :  { %v819_v35 = vpop.trf.xlu1 }
 0x358   :  { %v859_v37 = vmul.f32 %v846_v36, %v819_v35 }
 0x35a   :  { %v862_v41 = vadd.f32 %v859_v37, %v858_v39 }
 0x35b   :  { %v820_v38 = vpop.trf.xlu1 }
 0x35c   :  { %v860_v40 = vmul.f32 %v851_v31, %v820_v38 }
 0x35e   :  { %v863_v25 = vadd.f32 %v862_v41, %v860_v40 }
 0x35f   :  { %v821_v42 = vpop.trf.xlu1 }
 0x360   :  { %v861_v43 = vmul.f32 %v856_v32, %v821_v42 }
 0x362   :  { %v864_v45 = vadd.f32 %v863_v25, %v861_v43 }
 0x364   :  { %v865_v47 = vrot.slane %v864_v45, 4 }
 0x366   :  { %v866_v49 = vadd.f32 %v865_v47, %v864_v45 }
 0x368   :  { %v867_v50 = vrot.slane %v866_v49, 2 }
 0x36a   :  { %v868_v52 = vadd.f32 %v867_v50, %v866_v49 }
 0x36c   :  { %v869_v54 = vrot.slane %v868_v52, 1 }
 0x36e   :  { %v870_v56 = vadd.f32 %v869_v54, %v868_v52 }
 0x370   :  { %v881_v57 = vadd.f32 %v880_v55, %v870_v56 }
 0x372   :  { %882 = vst [vmem:[#allocation6] sm:$0x1] %v881_v57 }
 0x373   :  { %1269 = shalt.err (!%p1266_p12)
}
 0x374   :  { %s1270_s3 = scalar_lea.hbm %s1634_s9, 16 }
 0x375   :  { %p1271_p13 = scmp.ne.s32.totalorder %s1634_s9, %s1270_s3  ;;  %p1274_p0 = scmp.lt.u32.totalorder %s1270_s3, %s1634_s9 }
 0x377   :  { %p1276_p1 = pnand %p1274_p0, %p1271_p13 }
 0x379   :  { %1279 = shalt.err (!%p1276_p1)
}
 0x37a   :  { %892 = dma.vmem_to_hbm [thread:$0]  %s890_s7, 16, %s1634_s9, [#allocation5]  }
 0x37b   :  { %1282 = dma.done.wait [#allocation5], 16  }
 0x37c   :  { %1283 = vsyncadd [#allocation5], 4294967280 }
 0x37d   :  { %896 = vsyncpa [#allocation4], 1 }
 0x37e   :  { %897 = vsyncpa [#allocation5], 1 }

</bundles_post_ra>
